<compile_context>
chip_gen: v7x
topology: tpu7x:2x2x1
jax: 0.10.0
libtpu: 0.0.40
codegen_flags: <defaults>
</compile_context>

<pallas_src>
import jax
import jax.numpy as jnp
from jax.experimental import pallas as pl
from jax.experimental.pallas import tpu as pltpu

_H = 64  # Critic hidden width: nn.Linear(input_size, 64)


def _round_up(n, m):
    return ((n + m - 1) // m) * m


def critic_kernel(x_ref, w1_ref, b1_ref, w2_ref, b2_ref, o_ref):
    # fc1 + ReLU: (TM, D) @ (D, 64) -> (TM, 64) on the MXU, f32 accumulation.
    h = jnp.dot(x_ref[...], w1_ref[...], preferred_element_type=jnp.float32)
    h = jnp.maximum(h + b1_ref[...], 0.0)                       # VPU: bias + ReLU
    # fc2, lane-dense and transpose-free: contract the H axis of w2 (1, 64)
    # against the H axis of h (TM, 64) -> (1, TM).  Folding the transpose into
    # dot_general lets Mosaic feed the MXU a transposed operand instead of
    # relaying a (TM, 64) h.T through the XLU + a VMEM temp every grid step.
    v = jax.lax.dot_general(
        w2_ref[...], h,
        dimension_numbers=(((1,), (1,)), ((), ())),
        preferred_element_type=jnp.float32,
    )
    o_ref[...] = (v + b2_ref[0, 0]).astype(o_ref.dtype)          # dense (1, TM) store


def _select_tiling(B, D, itemsize, *, tile_bytes=2 << 20, vmem_budget=40 << 20):
    """Pick (TM, G): MiB-scale x tiles, v7x-safe VMEM working set, balanced
    tiles (minimal padding), and G >= 2 when the batch can feed both of v7x's
    TensorCores."""
    # Working-set model (everything double-buffered by the pipeline):
    #   x tile   : 2 * TM * D * itemsize
    #   out tile : 2 * TM * 4
    #   W1/b1/W2 : 2 * (D*_H + 2*_H) * itemsize   (constant index, still 2 bufs)
    fixed = 2 * (D * _H + 2 * _H) * itemsize
    per_row = 2 * (D * itemsize + 4)
    tm_cap = max(8, (vmem_budget - fixed) // per_row)
    # Rows per tile needed to hit the per-step byte target.
    tm_target = max(8, min(tm_cap, tile_bytes // max(1, D * itemsize)))

    if B <= 256:
        # Tiny batch: one balanced tile; splitting would leave <128 useful
        # lanes per core anyway.
        tm = _round_up(B, 8)
    elif B <= 2 * tm_target:
        # Two balanced 128-aligned tiles so both v7x TensorCores get work.
        tm = _round_up(pl.cdiv(B, 2), 128)
    else:
        # Large batch: choose G from the byte target first, then balance the
        # tiles (avoids a nearly-empty last tile / wasted HBM traffic).
        g = max(2, pl.cdiv(B, tm_target))
        tm = _round_up(pl.cdiv(B, g), 128)

    if tm > tm_cap:
        # Clamp to the VMEM budget; keep 128-lane alignment for the output
        # block (required whenever G > 1).  D large enough to push TM below
        # 128 (> ~40k f32 features) would need a K-tiled fc1 — far outside
        # this critic's regime.
        tm = max(128, (tm_cap // 128) * 128)

    g = pl.cdiv(B, tm)
    if g == 1:
        tm = _round_up(B, 8)   # single tile: shrink to the batch (full-dim block)
    return tm, g


def critic_forward(x, w1, b1, w2, b2, *, stream_dtype=None):
    """Critic forward: relu(x @ w1 + b1) @ w2.T + b2 -> (B, 1) float32.

    x: (B, D); w1: (D, 64); b1: (1, 64); w2: (1, 64); b2: (1, 1).
    stream_dtype: optionally cast the streamed x / resident W1 (e.g. bf16) to
    halve HBM traffic; accumulation and output stay f32, but results then
    differ from the f32 reference beyond 1e-5.
    """
    B, D = x.shape
    H = w1.shape[1]
    assert w1.shape == (D, H) and b1.shape == (1, H)
    assert w2.shape == (1, H) and b2.shape == (1, 1)

    if stream_dtype is not None:
        x = x.astype(stream_dtype)
        w1 = w1.astype(stream_dtype)
    itemsize = jnp.dtype(x.dtype).itemsize

    TM, G = _select_tiling(B, D, itemsize)
    B_pad = G * TM
    if B_pad != B:
        x = jnp.pad(x, ((0, B_pad - B), (0, 0)))

    # Scoped VMEM limit from the actual working set, capped v7x-safe
    # (64 MiB physical per TensorCore).
    working_set = (2 * TM * D * itemsize + 2 * TM * 4
                   + 2 * (D * H + 2 * H) * itemsize)
    vmem_limit = int(min(60 << 20, max(16 << 20, working_set + (2 << 20))))

    out = pl.pallas_call(
        critic_kernel,
        out_shape=jax.ShapeDtypeStruct((1, B_pad), jnp.float32),
        grid=(G,),
        in_specs=[
            pl.BlockSpec((TM, D), lambda i: (i, 0)),            # streamed x tiles
            pl.BlockSpec((D, H), lambda i: (0, 0)),             # resident W1
            pl.BlockSpec((1, H), lambda i: (0, 0)),             # resident b1
            pl.BlockSpec((1, H), lambda i: (0, 0)),             # resident W2 (1, 64)
            pl.BlockSpec(memory_space=pltpu.MemorySpace.SMEM),  # scalar b2
        ],
        out_specs=pl.BlockSpec((1, TM), lambda i: (0, i)),      # lane-dense row
        compiler_params=pltpu.CompilerParams(
            dimension_semantics=("parallel",),
            vmem_limit_bytes=vmem_limit,
        ),
    )(x, w1, b1, w2, b2)

    # (1, B_pad) row-major == batch order; drop padded rows.
    return out.reshape(B_pad, 1)[:B]


def init_critic_params(key, input_size, hidden=_H, dtype=jnp.float32):
    # Deterministic init mimicking nn.Linear's U(-1/sqrt(fan_in), 1/sqrt(fan_in)).
    k1, k2, k3, k4 = jax.random.split(key, 4)
    lim1 = 1.0 / float(input_size) ** 0.5
    lim2 = 1.0 / float(hidden) ** 0.5
    w1 = jax.random.uniform(k1, (input_size, hidden), dtype, -lim1, lim1)
    b1 = jax.random.uniform(k2, (1, hidden), dtype, -lim1, lim1)
    w2 = jax.random.uniform(k3, (1, hidden), dtype, -lim2, lim2)  # fc2.weight layout
    b2 = jax.random.uniform(k4, (1, 1), dtype, -lim2, lim2)
    return w1, b1, w2, b2


if __name__ == "__main__":
    key = jax.random.PRNGKey(0)
    k_x, k_p, k_x2 = jax.random.split(key, 3)

    batch, input_size = 8, 32
    x = jax.random.normal(k_x, (batch, input_size), jnp.float32)
    w1, b1, w2, b2 = init_critic_params(k_p, input_size)

    out = jax.block_until_ready(critic_forward(x, w1, b1, w2, b2))
    ref = jnp.maximum(x @ w1 + b1, 0.0) @ w2.T + b2
    assert out.shape == (batch, 1)
    assert jnp.allclose(out, ref, atol=1e-5, rtol=1e-5)

    # Exercise the multi-tile path (G > 1, B not a multiple of TM, padding).
    batch2 = 300
    x2 = jax.random.normal(k_x2, (batch2, input_size), jnp.float32)
    out2 = jax.block_until_ready(critic_forward(x2, w1, b1, w2, b2))
    ref2 = jnp.maximum(x2 @ w1 + b1, 0.0) @ w2.T + b2
    assert out2.shape == (batch2, 1)
    assert jnp.allclose(out2, ref2, atol=1e-5, rtol=1e-5)

    print("KERNEL_OK")
</pallas_src>

<mosaic_0001>
module attributes {stable_mosaic.version = 11 : i64} {
  func.func @critic_kernel(%arg0: i32, %arg1: memref<8x32xf32, #tpu.memory_space<vmem>>, %arg2: memref<32x64xf32, #tpu.memory_space<vmem>>, %arg3: memref<1x64xf32, #tpu.memory_space<vmem>>, %arg4: memref<1x64xf32, #tpu.memory_space<vmem>>, %arg5: memref<1x1xf32, #tpu.memory_space<smem>>, %arg6: memref<1x8xf32, #tpu.memory_space<vmem>>) attributes {dimension_semantics = [#tpu.dimension_semantics<parallel>], iteration_bounds = array<i64: 1>, scalar_prefetch = 0 : i64, scratch_operands = 0 : i64, tpu.core_type = #tpu.core_type<tc>, window_params = [{transform_indices = @transform_0, window_bounds = array<i64: 8, 32>}, {pipeline_mode = #tpu.pipeline_mode<synchronous>, transform_indices = @transform_1, window_bounds = array<i64: 32, 64>}, {pipeline_mode = #tpu.pipeline_mode<synchronous>, transform_indices = @transform_2, window_bounds = array<i64: 1, 64>}, {pipeline_mode = #tpu.pipeline_mode<synchronous>, transform_indices = @transform_3, window_bounds = array<i64: 1, 64>}, {transform_indices = @transform_4, window_bounds = array<i64: 1, 1>}, {transform_indices = @transform_5, window_bounds = array<i64: 1, 8>}]} {
    %c0 = arith.constant 0 : index
    %c0_0 = arith.constant 0 : index
    %0 = vector.load %arg1[%c0, %c0_0] : memref<8x32xf32, #tpu.memory_space<vmem>>, vector<8x32xf32>
    %c0_1 = arith.constant 0 : index
    %c0_2 = arith.constant 0 : index
    %1 = vector.load %arg2[%c0_1, %c0_2] : memref<32x64xf32, #tpu.memory_space<vmem>>, vector<32x64xf32>
    %cst = arith.constant dense<0.000000e+00> : vector<8x64xf32>
    %2 = tpu.matmul %0, %1, %cst {dimension_numbers = #tpu.dot_dimension_numbers<[1], [0], [0], [1], [0, 0, 1, 1], [], []>} : vector<8x32xf32>, vector<32x64xf32>, vector<8x64xf32> -> vector<8x64xf32>
    %c0_3 = arith.constant 0 : index
    %c0_4 = arith.constant 0 : index
    %3 = vector.load %arg3[%c0_3, %c0_4] : memref<1x64xf32, #tpu.memory_space<vmem>>, vector<1x64xf32>
    %4 = vector.broadcast %3 : vector<1x64xf32> to vector<8x64xf32>
    %5 = arith.addf %2, %4 : vector<8x64xf32>
    %cst_5 = arith.constant 0.000000e+00 : f32
    %6 = vector.broadcast %cst_5 : f32 to vector<8x64xf32>
    %7 = arith.maximumf %5, %6 : vector<8x64xf32>
    %c0_6 = arith.constant 0 : index
    %c0_7 = arith.constant 0 : index
    %8 = vector.load %arg4[%c0_6, %c0_7] : memref<1x64xf32, #tpu.memory_space<vmem>>, vector<1x64xf32>
    %cst_8 = arith.constant dense<0.000000e+00> : vector<1x8xf32>
    %9 = tpu.matmul %8, %7, %cst_8 {dimension_numbers = #tpu.dot_dimension_numbers<[1], [1], [0], [0], [0, 0, 1, 0], [], []>} : vector<1x64xf32>, vector<8x64xf32>, vector<1x8xf32> -> vector<1x8xf32>
    %c0_9 = arith.constant 0 : index
    %c0_10 = arith.constant 0 : index
    %10 = memref.load %arg5[%c0_9, %c0_10] : memref<1x1xf32, #tpu.memory_space<smem>>
    %11 = vector.broadcast %10 : f32 to vector<1x8xf32>
    %12 = arith.addf %9, %11 : vector<1x8xf32>
    %c0_11 = arith.constant 0 : index
    %c0_12 = arith.constant 0 : index
    %13 = vector.load %arg6[%c0_11, %c0_12] : memref<1x8xf32, #tpu.memory_space<vmem>>, vector<1x8xf32>
    tpu.vector_store %arg6[%c0_11, %c0_12], %12 {strides = array<i32>} : memref<1x8xf32, #tpu.memory_space<vmem>>, vector<1x8xf32>,
    return
  }
  func.func @transform_0(%arg0: i32) -> (i32, i32) {
    %c0_i32 = arith.constant 0 : i32
    %c0_i32_0 = arith.constant 0 : i32
    return %arg0, %c0_i32 : i32, i32
  }
  func.func @transform_1(%arg0: i32) -> (i32, i32) {
    %c0_i32 = arith.constant 0 : i32
    %c0_i32_0 = arith.constant 0 : i32
    %c0_i32_1 = arith.constant 0 : i32
    return %c0_i32, %c0_i32_0 : i32, i32
  }
  func.func @transform_2(%arg0: i32) -> (i32, i32) {
    %c0_i32 = arith.constant 0 : i32
    %c0_i32_0 = arith.constant 0 : i32
    %c0_i32_1 = arith.constant 0 : i32
    return %c0_i32, %c0_i32_0 : i32, i32
  }
  func.func @transform_3(%arg0: i32) -> (i32, i32) {
    %c0_i32 = arith.constant 0 : i32
    %c0_i32_0 = arith.constant 0 : i32
    %c0_i32_1 = arith.constant 0 : i32
    return %c0_i32, %c0_i32_0 : i32, i32
  }
  func.func @transform_4(%arg0: i32) -> (i32, i32) {
    %c0_i32 = arith.constant 0 : i32
    %c0_i32_0 = arith.constant 0 : i32
    %c0_i32_1 = arith.constant 0 : i32
    return %c0_i32, %c0_i32_0 : i32, i32
  }
  func.func @transform_5(%arg0: i32) -> (i32, i32) {
    %c0_i32 = arith.constant 0 : i32
    %c0_i32_0 = arith.constant 0 : i32
    return %c0_i32, %arg0 : i32, i32
  }
}

</mosaic_0001>

<bundles_post_ra>
// kernel: tpu_custom_call.1
= control target key start
LH: loop header
LB: loop body
LE: loop exit
PB: predicated region body
PF: predicated region fallthrough
CT: control target
= control target key end

     0   :  { %11 = vsyncpa [#allocation4], 0  ;;  %s436_s0 = inlined_call_operand.hbm [shape: f32[8,32], index: 0, kind: input, shape index: {}]   ;;  %s437_s1 = inlined_call_operand.hbm [shape: f32[32,64], index: 1, kind: input, shape index: {}]   ;;  %s438_s2 = inlined_call_operand.vmem [shape: f32[1,64], index: 2, kind: input, shape index: {}]   ;;  %s439_s3 = inlined_call_operand.vmem [shape: f32[1,64], index: 3, kind: input, shape index: {}]   ;;  %s440_s4 = inlined_call_operand.<no memory space> [shape: f32[1,1], index: 4, kind: input, shape index: {}]   ;;  %s441_s5 = inlined_call_operand.hbm [shape: f32[1,8], index: 5, kind: output, shape index: {}]  }
   0x1   :  { %12 = vsyncpa [#allocation7], 0 }
   0x2   :  { %13 = vsyncpa [#allocation5], 0  ;;  %s346_s18 = smov [#allocation3]   ;;  %s347_s20 = smov [#allocation6]  }
   0x3   :  { %s20_s19 = sshll.u32 %s346_s18, 4  ;;  %s29_s21 = sshll.u32 %s347_s20, 4  ;;  %s21_s19 = int_to_ptr.vmem [resolvable:$true] %s20_s19  ;;  %s384_s21 = int_to_ptr.vmem [resolvable:$true] %s29_s21 }
   0x4   :  { %s274_s24 = scalar_lea.hbm %s436_s0, 128 }
   0x5   :  { %p275_p0 = scmp.ne.s32.totalorder %s436_s0, %s274_s24  ;;  %p278_p1 = scmp.lt.u32.totalorder %s274_s24, %s436_s0 }
   0x7   :  { %p280_p2 = pnand %p278_p1, %p275_p0 }
   0x9   :  { %283 = shalt.err (!%p280_p2)
}
   0xa   :  { %s284_s29 = scalar_lea.vmem %s21_s19, 128  ;;  %p289_p4 = scmp.lt.s32.totalorder %s21_s19, %s21_s19 }
   0xb   :  { %p285_p3 = scmp.ne.s32.totalorder %s21_s19, %s284_s29  ;;  %p290_p5 = scmp.lt.s32.totalorder %s284_s29, %s284_s29 }
   0xd   :  { %p291_p6 = por %p290_p5, %p289_p4 }
   0xf   :  { %p292_p7 = pnand %p291_p6, %p285_p3 }
  0x11   :  { %295 = shalt.err (!%p292_p7)
}
  0x12   :  { %23 = dma.hbm_to_vmem [thread:$0]  %s436_s0, 128, %s21_s19, [#allocation4]  }
  0x13   :  { %s296_s9 = scalar_lea.hbm %s437_s1, 512 }
  0x14   :  { %p297_p8 = scmp.ne.s32.totalorder %s437_s1, %s296_s9  ;;  %p300_p9 = scmp.lt.u32.totalorder %s296_s9, %s437_s1 }
  0x16   :  { %p302_p10 = pnand %p300_p9, %p297_p8 }
  0x18   :  { %305 = shalt.err (!%p302_p10)
}
  0x19   :  { %s306_s14 = scalar_lea.vmem %s384_s21, 512  ;;  %p311_p12 = scmp.lt.s32.totalorder %s384_s21, %s384_s21 }
  0x1a   :  { %p307_p11 = scmp.ne.s32.totalorder %s384_s21, %s306_s14  ;;  %p312_p13 = scmp.lt.s32.totalorder %s306_s14, %s306_s14 }
  0x1c   :  { %p313_p0 = por %p312_p13, %p311_p12 }
  0x1e   :  { %p314_p1 = pnand %p313_p0, %p307_p11 }
  0x20   :  { %317 = shalt.err (!%p314_p1)
}
  0x21   :  { %s348_s0 = smov 128   ;;  %s349_s15 = smov 8  }
  0x22   :  { %35 = dma.hbm_to_vmem [thread:$0]  %s437_s1, 512, %s384_s21, [#allocation7], %s348_s0, %s348_s0, %s349_s15  }
  0x23   :  { %340 = dma.done.wait [#allocation4], 128  }
  0x24   :  { %341 = vsyncadd [#allocation4], 4294967168 }
  0x25   :  { %342 = dma.done.wait [#allocation7], 512  }
  0x26   :  { %343 = vsyncadd [#allocation7], 4294966784  ;;  %v350_v0 = vmov 0.0|0.0   ;;  %vm351_vm0 = vmmov 0   ;;  %v352_v1 = vmov 0.0   ;;  %v49_v2 = vld [vmem:[#allocation6] sm:$0xff]  ;;  %v137_v15 = vstv %s440_s4 }
  0x27   :  { %260 = vmatprep.subr.bf16.mxu0 %v350_v0  ;;  %252 = vmatprep.mubr.msk.f32.mxu0 %vm351_vm0, %v352_v1  ;;  %v50_v3 = vld [vmem:[#allocation6 + $0x8] sm:$0xff]  ;;  %v51_v4 = vld [vmem:[#allocation6 + $0x10] sm:$0xff]  ;;  %v52_v6 = vld [vmem:[#allocation6 + $0x18] sm:$0xff]  ;;  %vm60_vm1 = vcmask 261120   ;;  %vm138_vm2 = vcmask 523264   ;;  %s353_s23 = smov [#allocation8]  }
  0x28   :  { %255 = vmatprep.subr.mxu1 %v352_v1  ;;  %257 = vmatprep.mubr.msk.f32.mxu1 %vm351_vm0, %v352_v1  ;;  %v261_v5 = vpack.c.bf16 %v50_v3, %v49_v2  ;;  %v264_v7 = vpack.c.bf16 %v52_v6, %v51_v4  ;;  %v48_v8 = vld [vmem:[#allocation3] sm:$0xff]  ;;  %s223_s24 = sshll.u32 %s353_s23, 4  ;;  %vm215_vm3 = vcmask 57344   ;;  %s224_s24 = int_to_ptr.vmem [resolvable:$true] %s223_s24 }
  0x29   :  { %v233_v9 = vld [vmem:[%s438_s2] ss:$0 sm:$0xff]  ;;  %s318_s2 = scalar_lea.vmem %s224_s24, 16  ;;  %s322_s25 = scalar_lea.vmem %s224_s24, 32 }
  0x2a   :  { %262 = vmatpush3.bf16.msra.mxu0 %v261_v5  ;;  %v135_v14 = vld [vmem:[%s439_s3] sm:$0x1]  ;;  %p319_p2 = scmp.ne.s32.totalorder %s224_s24, %s318_s2  ;;  %p323_p3 = scmp.lt.s32.totalorder %s224_s24, %s224_s24 }
  0x2b   :  { %263 = vmatprep.subr.bf16.mxu0 %v350_v0  ;;  %p324_p4 = scmp.lt.s32.totalorder %s322_s25, %s318_s2 }
  0x2d   :  { %p325_p5 = por %p324_p4, %p323_p3 }
  0x2e   :  { %265 = vmatpush3.bf16.msra.mxu0 %v264_v7 }
  0x2f   :  { %p326_p6 = pnand %p325_p5, %p319_p2 }
  0x31   :  { %253 = vmatmul.mubr.msk.f32.vlgmr.msra.gmra.mrb[0].mxu0 %vm60_vm1, %v48_v8 }
 0x104   :  { %v130_v10 = vpop.f32.mrb[0].mxu0 }
 0x105   :  { %v131_v11 = vadd.f32 %v233_v9, %v130_v10  ;;  %v254_v12 = vpop.f32.mrb[1].mxu0 }
 0x107   :  { %v134_v13 = vmax.f32 %v131_v11, 0.0 }
 0x109   :  { %256 = vmatpush3.xpose.msk.msra.mxu1 %vm138_vm2, %v134_v13 }
 0x10c   :  { %258 = vmatmul.mubr.msk.f32.vlgmr.msra.gmra.mrb[0].mxu1 %vm138_vm2, %v135_v14 }
 0x1df   :  { %v211_v16 = vpop.f32.mrb[0].mxu1 }
 0x1e0   :  { %v212_v17 = vadd.f32 %v211_v16, %v137_v15  ;;  %v259_v18 = vpop.f32.mrb[1].mxu1 }
 0x1e2   :  { %216 = vst.msk [vmem:[#allocation8] sm:$0x1] %vm215_vm3, %v212_v17 }
 0x1e3   :  { %329 = shalt.err (!%p326_p6)
}
 0x1e4   :  { %s330_s4 = scalar_lea.hbm %s441_s5, 16 }
 0x1e5   :  { %p331_p7 = scmp.ne.s32.totalorder %s441_s5, %s330_s4  ;;  %p334_p8 = scmp.lt.u32.totalorder %s330_s4, %s441_s5 }
 0x1e7   :  { %p336_p9 = pnand %p334_p8, %p331_p7 }
 0x1e9   :  { %339 = shalt.err (!%p336_p9)
}
 0x1ea   :  { %226 = dma.vmem_to_hbm [thread:$0]  %s224_s24, 16, %s441_s5, [#allocation5]  }
 0x1eb   :  { %344 = dma.done.wait [#allocation5], 16  }
 0x1ec   :  { %345 = vsyncadd [#allocation5], 4294967280 }
 0x1ed   :  { %230 = vsyncpa [#allocation4], 1 }
 0x1ee   :  { %231 = vsyncpa [#allocation7], 1 }
 0x1ef   :  { %232 = vsyncpa [#allocation5], 1 }

</bundles_post_ra>
